<compile_context>
chip_gen: v7x
topology: tpu7x:2x2x1
jax: 0.10.0
libtpu: 0.0.40
codegen_flags: <defaults>
</compile_context>

<pallas_src>
import jax
import jax.numpy as jnp
from jax import lax
from jax.experimental import pallas as pl
from jax.experimental.pallas import tpu as pltpu


def prepare_dynamic_memory_params(K_keys, W_h, W_k, W_i):
    """One-time prep (hoist out of any scan/loop): bf16 [W_h | W_i] slab and the
    constant candidate bias  K_keys @ W_k.T  in f32."""
    W_cat = jnp.concatenate([W_h, W_i], axis=1).astype(jnp.bfloat16)   # (D, 2D)
    bias = jnp.dot(K_keys.astype(jnp.float32), W_k.T.astype(jnp.float32),
                   precision=lax.Precision.HIGHEST)                    # (d_key, D) f32
    return W_cat, bias


def _cell_step(x32, h32, k32, wh_b, wi_b, bias):
    """One DynamicMemory step on 2-D arrays (pure jnp/lax; usable in-kernel and
    as a reference). bf16 MXU operands, f32 accumulation, f32 elementwise."""
    xb = x32.astype(jnp.bfloat16)
    hb = h32.astype(jnp.bfloat16)
    hkb = (h32 + k32).astype(jnp.bfloat16)

    # G = sigmoid(x.T @ H + x.T @ K) == sigmoid(x.T @ (H + K))  (algebraic fold).
    g = jax.nn.sigmoid(
        lax.dot_general(xb, hkb, (((0,), (0,)), ((), ())),
                        preferred_element_type=jnp.float32))

    # H_candidate = tanh(H @ W_h.T + x @ W_i.T + (K @ W_k.T))   (bias precomputed).
    pre = lax.dot_general(hb, wh_b, (((1,), (1,)), ((), ())),
                          preferred_element_type=jnp.float32)
    pre = pre + lax.dot_general(xb, wi_b, (((1,), (1,)), ((), ())),
                                preferred_element_type=jnp.float32)
    cand = jnp.tanh(pre + bias)

    # F.normalize(H + G*cand, p=2, dim=1, eps=1e-12): clamp sumsq at eps^2, rsqrt (EUP).
    s = h32 + g * cand
    inv = lax.rsqrt(jnp.maximum(jnp.sum(s * s, axis=1, keepdims=True), 1e-24))
    return s * inv


# ---------------------------------------------------------------------------
# Single step, no grid: every operand whole-array resident in VMEM.
# ---------------------------------------------------------------------------
def _dm_single_kernel(x_ref, h_ref, k_ref, wc_ref, bias_ref, out_ref):
    Dh = h_ref.shape[1]
    wc = wc_ref[...]                                   # (D, 2D) bf16
    out = _cell_step(x_ref[...].astype(jnp.float32),
                     h_ref[...].astype(jnp.float32),
                     k_ref[...].astype(jnp.float32),
                     wc[:, :Dh], wc[:, Dh:], bias_ref[...])
    out_ref[...] = out.astype(out_ref.dtype)


def dynamic_memory(x_t, H_t, K_keys, W_cat, bias):
    d_key, d_hidden = H_t.shape
    vmem = lambda: pl.BlockSpec(memory_space=pltpu.MemorySpace.VMEM)
    return pl.pallas_call(
        _dm_single_kernel,
        out_shape=jax.ShapeDtypeStruct((d_key, d_hidden), H_t.dtype),
        in_specs=[vmem() for _ in range(5)],
        out_specs=vmem(),
    )(x_t, H_t, K_keys, W_cat, bias)


# ---------------------------------------------------------------------------
# Batched: B_tile independent cells per grid step, weights/K/bias resident.
# ---------------------------------------------------------------------------
def _dm_batched_kernel(x_ref, h_ref, k_ref, wc_ref, bias_ref, out_ref):
    x32 = x_ref[...].astype(jnp.float32)               # (Bt, N, D)
    h32 = h_ref[...].astype(jnp.float32)               # (Bt, N, D)
    k32 = k_ref[...].astype(jnp.float32)               # (N, D)
    wc = wc_ref[...]                                   # (D, 2D) bf16
    bias = bias_ref[...]                               # (N, D) f32

    Bt, N, Dh = h32.shape
    xb = x32.astype(jnp.bfloat16)
    hb = h32.astype(jnp.bfloat16)
    hkb = (h32 + k32[None]).astype(jnp.bfloat16)

    # Gate: batched x.T @ (H + K) so the MXU passes issue back-to-back.
    g = jax.nn.sigmoid(
        jnp.einsum('bnd,bnh->bdh', xb, hkb, preferred_element_type=jnp.float32))

    # Candidate: flatten [H | x] to (Bt*N, 2D) -> ONE K=256 matmul vs the slab.
    a = jnp.concatenate([hb, xb], axis=2).reshape(Bt * N, 2 * Dh)
    pre = lax.dot_general(a, wc, (((1,), (1,)), ((), ())),
                          preferred_element_type=jnp.float32)
    cand = jnp.tanh(pre.reshape(Bt, N, Dh) + bias[None])

    s = h32 + g * cand
    inv = lax.rsqrt(jnp.maximum(jnp.sum(s * s, axis=-1, keepdims=True), 1e-24))
    out_ref[...] = (s * inv).astype(out_ref.dtype)


def dynamic_memory_batched(x, H, K_keys, W_cat, bias, *, num_blocks=2):
    B, N, d_in = x.shape
    _, d_key, d_hidden = H.shape
    if B % num_blocks != 0:
        num_blocks = 1
    B_tile = B // num_blocks

    grid_spec = pltpu.PrefetchScalarGridSpec(
        num_scalar_prefetch=0,
        grid=(num_blocks,),
        in_specs=[
            pl.BlockSpec((B_tile, N, d_in), lambda b: (b, 0, 0)),
            pl.BlockSpec((B_tile, d_key, d_hidden), lambda b: (b, 0, 0)),
            pl.BlockSpec((d_key, d_hidden), lambda b: (0, 0)),      # resident
            pl.BlockSpec(W_cat.shape, lambda b: (0, 0)),            # resident
            pl.BlockSpec(bias.shape, lambda b: (0, 0)),             # resident
        ],
        out_specs=pl.BlockSpec((B_tile, d_key, d_hidden), lambda b: (b, 0, 0)),
    )
    return pl.pallas_call(
        _dm_batched_kernel,
        out_shape=jax.ShapeDtypeStruct((B, d_key, d_hidden), H.dtype),
        grid_spec=grid_spec,
        compiler_params=pltpu.CompilerParams(
            dimension_semantics=("parallel",)),   # 2 blocks -> both TCs on v7x
    )(x, H, K_keys, W_cat, bias)


# ---------------------------------------------------------------------------
# Recurrent: T timesteps in one pallas_call, H kept in a VMEM f32 accumulator.
# ---------------------------------------------------------------------------
def _dm_recurrent_kernel(x_ref, h0_ref, k_ref, wc_ref, bias_ref, out_ref, h_sc):
    t = pl.program_id(0)

    @pl.when(t == 0)
    def _():
        h_sc[...] = h0_ref[...].astype(jnp.float32)

    Dh = h0_ref.shape[1]
    wc = wc_ref[...]
    h_new = _cell_step(x_ref[...].astype(jnp.float32), h_sc[...],
                       k_ref[...].astype(jnp.float32),
                       wc[:, :Dh], wc[:, Dh:], bias_ref[...])
    h_sc[...] = h_new

    @pl.when(t == pl.num_programs(0) - 1)
    def _():
        out_ref[...] = h_new.astype(out_ref.dtype)


def dynamic_memory_recurrent(x_seq, H0, K_keys, W_cat, bias):
    T, N, d_in = x_seq.shape
    d_key, d_hidden = H0.shape
    grid_spec = pltpu.PrefetchScalarGridSpec(
        num_scalar_prefetch=0,
        grid=(T,),
        in_specs=[
            pl.BlockSpec((None, N, d_in), lambda t: (t, 0, 0)),     # x_t streamed
            pl.BlockSpec((d_key, d_hidden), lambda t: (0, 0)),      # H0 resident
            pl.BlockSpec((d_key, d_hidden), lambda t: (0, 0)),      # K resident
            pl.BlockSpec(W_cat.shape, lambda t: (0, 0)),            # W resident
            pl.BlockSpec(bias.shape, lambda t: (0, 0)),             # bias resident
        ],
        out_specs=pl.BlockSpec((d_key, d_hidden), lambda t: (0, 0)),
        scratch_shapes=[pltpu.VMEM((d_key, d_hidden), jnp.float32)],
    )
    return pl.pallas_call(
        _dm_recurrent_kernel,
        out_shape=jax.ShapeDtypeStruct((d_key, d_hidden), H0.dtype),
        grid_spec=grid_spec,
        compiler_params=pltpu.CompilerParams(
            dimension_semantics=("arbitrary",)),
    )(x_seq, H0, K_keys, W_cat, bias)


if __name__ == "__main__":
    # d_in == d_key == d_hidden is required for the torch forward to type-check.
    # D = 128 keeps the lane axis dense (unmasked stores, full vreg/MXU lanes).
    D, B, T = 128, 4, 8

    key = jax.random.PRNGKey(0)
    kx, kh, kwh, kwk, kwi, kxs = jax.random.split(key, 6)

    x = jax.random.normal(kx, (B, D, D), jnp.float32)     # per-cell x_t (N=d_key, d_in)
    H = jax.random.normal(kh, (B, D, D), jnp.float32)     # per-cell H_t (d_key, d_hidden)
    K_keys = jnp.ones((D, D), jnp.float32)                # as in __init__: ones((d_key, d_hidden))
    scale = 1.0 / jnp.sqrt(D)
    W_h = jax.random.uniform(kwh, (D, D), jnp.float32, -scale, scale)
    W_k = jax.random.uniform(kwk, (D, D), jnp.float32, -scale, scale)
    W_i = jax.random.uniform(kwi, (D, D), jnp.float32, -scale, scale)

    W_cat, bias = prepare_dynamic_memory_params(K_keys, W_h, W_k, W_i)

    # Pure-JAX f32 reference of the original torch formulation (semantic ground truth).
    def ref_step(x_t, H_t):
        hp = lax.Precision.HIGHEST
        g = jax.nn.sigmoid(jnp.dot(x_t.T, H_t, precision=hp)
                           + jnp.dot(x_t.T, K_keys, precision=hp))
        h_cand = jnp.tanh(jnp.dot(H_t, W_h.T, precision=hp)
                          + jnp.dot(K_keys, W_k.T, precision=hp)
                          + jnp.dot(x_t, W_i.T, precision=hp))
        s = H_t + g * h_cand
        return s / jnp.maximum(
            jnp.sqrt(jnp.sum(s * s, axis=1, keepdims=True)), 1e-12)

    # Single-step kernel (no grid, whole operands in VMEM).
    out1 = jax.block_until_ready(dynamic_memory(x[0], H[0], K_keys, W_cat, bias))
    ref1 = ref_step(x[0], H[0])

    # Batched kernel (B_tile cells per grid step, weights resident, 2-way parallel grid).
    outB = jax.block_until_ready(dynamic_memory_batched(x, H, K_keys, W_cat, bias))
    refB = jax.vmap(ref_step)(x, H)

    # Tolerance covers bf16 MXU operands (f32 accumulation) vs the f32 HIGHEST reference.
    assert out1.shape == (D, D) and outB.shape == (B, D, D)
    assert jnp.allclose(out1, ref1, atol=2e-2, rtol=2e-2), "single-step mismatch vs reference"
    assert jnp.allclose(outB, refB, atol=2e-2, rtol=2e-2), "batched mismatch vs reference"

    # Recurrent kernel: T steps with H resident in VMEM. Checked against a
    # lax.scan over the SAME bf16 step math (per-step semantics already verified
    # above against the f32 reference).
    x_seq = jax.random.normal(kxs, (T, D, D), jnp.float32)
    outT = jax.block_until_ready(
        dynamic_memory_recurrent(x_seq, H[0], K_keys, W_cat, bias))

    def scan_ref(x_seq, h0):
        def body(h, x_t):
            h_new = _cell_step(x_t.astype(jnp.float32), h,
                               K_keys.astype(jnp.float32),
                               W_cat[:, :D], W_cat[:, D:], bias)
            return h_new, None
        h_final, _ = lax.scan(body, h0.astype(jnp.float32), x_seq)
        return h_final

    refT = scan_ref(x_seq, H[0])
    assert outT.shape == (D, D)
    assert jnp.allclose(outT, refT.astype(outT.dtype), atol=2e-2, rtol=2e-2), \
        "recurrent mismatch vs scan reference"

    print("KERNEL_OK")
</pallas_src>

<mosaic_0001>
module attributes {stable_mosaic.version = 11 : i64} {
  func.func @_dm_single_kernel(%arg0: memref<128x128xf32, #tpu.memory_space<vmem>>, %arg1: memref<128x128xf32, #tpu.memory_space<vmem>>, %arg2: memref<128x128xf32, #tpu.memory_space<vmem>>, %arg3: memref<128x256xbf16, #tpu.memory_space<vmem>>, %arg4: memref<128x128xf32, #tpu.memory_space<vmem>>, %arg5: memref<128x128xf32, #tpu.memory_space<vmem>>) attributes {dimension_semantics = [], scalar_prefetch = 0 : i64, scratch_operands = 0 : i64, tpu.core_type = #tpu.core_type<tc>} {
    %c0 = arith.constant 0 : index
    %c0_0 = arith.constant 0 : index
    %0 = vector.load %arg3[%c0, %c0_0] : memref<128x256xbf16, #tpu.memory_space<vmem>>, vector<128x256xbf16>
    %c0_1 = arith.constant 0 : index
    %c0_2 = arith.constant 0 : index
    %1 = vector.load %arg0[%c0_1, %c0_2] : memref<128x128xf32, #tpu.memory_space<vmem>>, vector<128x128xf32>
    %c0_3 = arith.constant 0 : index
    %c0_4 = arith.constant 0 : index
    %2 = vector.load %arg1[%c0_3, %c0_4] : memref<128x128xf32, #tpu.memory_space<vmem>>, vector<128x128xf32>
    %c0_5 = arith.constant 0 : index
    %c0_6 = arith.constant 0 : index
    %3 = vector.load %arg2[%c0_5, %c0_6] : memref<128x128xf32, #tpu.memory_space<vmem>>, vector<128x128xf32>
    %4 = vector.extract_strided_slice %0 {offsets = [0, 0], sizes = [128, 128], strides = [1, 1]} : vector<128x256xbf16> to vector<128x128xbf16>
    %5 = vector.extract_strided_slice %0 {offsets = [0, 128], sizes = [128, 128], strides = [1, 1]} : vector<128x256xbf16> to vector<128x128xbf16>
    %c0_7 = arith.constant 0 : index
    %c0_8 = arith.constant 0 : index
    %6 = vector.load %arg4[%c0_7, %c0_8] : memref<128x128xf32, #tpu.memory_space<vmem>>, vector<128x128xf32>
    %7 = arith.truncf %1 : vector<128x128xf32> to vector<128x128xbf16>
    %8 = arith.truncf %2 : vector<128x128xf32> to vector<128x128xbf16>
    %9 = arith.addf %2, %3 : vector<128x128xf32>
    %10 = arith.truncf %9 : vector<128x128xf32> to vector<128x128xbf16>
    %cst = arith.constant dense<0.000000e+00> : vector<128x128xf32>
    %11 = tpu.matmul %7, %10, %cst {dimension_numbers = #tpu.dot_dimension_numbers<[0], [0], [1], [1], [0, 1, 1, 1], [], []>} : vector<128x128xbf16>, vector<128x128xbf16>, vector<128x128xf32> -> vector<128x128xf32>
    %12 = arith.negf %11 : vector<128x128xf32>
    %13 = math.exp %12 : vector<128x128xf32>
    %cst_9 = arith.constant 1.000000e+00 : f32
    %14 = vector.broadcast %cst_9 : f32 to vector<128x128xf32>
    %15 = arith.addf %14, %13 : vector<128x128xf32>
    %16 = arith.divf %14, %15 : vector<128x128xf32>
    %cst_10 = arith.constant dense<0.000000e+00> : vector<128x128xf32>
    %17 = tpu.matmul %8, %4, %cst_10 {dimension_numbers = #tpu.dot_dimension_numbers<[1], [1], [0], [0], [0, 0, 1, 0], [], []>} : vector<128x128xbf16>, vector<128x128xbf16>, vector<128x128xf32> -> vector<128x128xf32>
    %cst_11 = arith.constant dense<0.000000e+00> : vector<128x128xf32>
    %18 = tpu.matmul %7, %5, %cst_11 {dimension_numbers = #tpu.dot_dimension_numbers<[1], [1], [0], [0], [0, 0, 1, 0], [], []>} : vector<128x128xbf16>, vector<128x128xbf16>, vector<128x128xf32> -> vector<128x128xf32>
    %19 = arith.addf %17, %18 : vector<128x128xf32>
    %20 = arith.addf %19, %6 : vector<128x128xf32>
    %21 = math.tanh %20 : vector<128x128xf32>
    %22 = arith.mulf %16, %21 : vector<128x128xf32>
    %23 = arith.addf %2, %22 : vector<128x128xf32>
    %24 = arith.mulf %23, %23 : vector<128x128xf32>
    %cst_12 = arith.constant dense<0.000000e+00> : vector<128xf32>
    %25 = vector.multi_reduction <add>, %24, %cst_12 [1] : vector<128x128xf32> to vector<128xf32>
    %26 = vector.shape_cast %25 : vector<128xf32> to vector<128x1xf32>
    %cst_13 = arith.constant 1.000000e-24 : f32
    %27 = vector.broadcast %cst_13 : f32 to vector<128x1xf32>
    %28 = arith.maximumf %26, %27 : vector<128x1xf32>
    %29 = math.rsqrt %28 : vector<128x1xf32>
    %30 = vector.broadcast %29 : vector<128x1xf32> to vector<128x128xf32>
    %31 = arith.mulf %23, %30 : vector<128x128xf32>
    %c0_14 = arith.constant 0 : index
    %c0_15 = arith.constant 0 : index
    %32 = vector.load %arg5[%c0_14, %c0_15] : memref<128x128xf32, #tpu.memory_space<vmem>>, vector<128x128xf32>
    tpu.vector_store %arg5[%c0_14, %c0_15], %31 {strides = array<i32>} : memref<128x128xf32, #tpu.memory_space<vmem>>, vector<128x128xf32>,
    return
  }
}

</mosaic_0001>

<bundles_post_ra>
// kernel: tpu_custom_call.1
= control target key start
LH: loop header
LB: loop body
LE: loop exit
PB: predicated region body
PF: predicated region fallthrough
CT: control target
= control target key end

     0   :  { %10 = vsyncpa [#allocation3], 0  ;;  %s1792_s0 = inlined_call_operand.hbm [shape: f32[128,128], index: 0, kind: input, shape index: {}]   ;;  %s1793_s1 = inlined_call_operand.hbm [shape: f32[128,128], index: 1, kind: input, shape index: {}]   ;;  %s1794_s2 = inlined_call_operand.hbm [shape: f32[128,128], index: 2, kind: input, shape index: {}]   ;;  %s1795_s3 = inlined_call_operand.hbm [shape: bf16[128,256], index: 3, kind: input, shape index: {}]   ;;  %s1796_s4 = inlined_call_operand.hbm [shape: f32[128,128], index: 4, kind: input, shape index: {}]   ;;  %s1797_s5 = inlined_call_operand.hbm [shape: f32[128,128], index: 5, kind: output, shape index: {}]  }
   0x1   :  { %11 = vsyncpa [#allocation6], 0 }
   0x2   :  { %12 = vsyncpa [#allocation9], 0 }
   0x3   :  { %13 = vsyncpa [#allocation4], 0  ;;  %s1380_s18 = smov [#allocation5]   ;;  %s1381_s20 = smov [#allocation8]  }
   0x4   :  { %s31_s19 = sshll.u32 %s1380_s18, 4  ;;  %s55_s21 = sshll.u32 %s1381_s20, 4  ;;  %s32_s19 = int_to_ptr.vmem [resolvable:$true] %s31_s19  ;;  %s1418_s21 = int_to_ptr.vmem [resolvable:$true] %s55_s21 }
   0x5   :  { %s1240_s24 = scalar_lea.hbm %s1793_s1, 2048 }
   0x6   :  { %p1241_p0 = scmp.ne.s32.totalorder %s1793_s1, %s1240_s24  ;;  %p1244_p1 = scmp.lt.u32.totalorder %s1240_s24, %s1793_s1 }
   0x8   :  { %p1246_p2 = pnand %p1244_p1, %p1241_p0 }
   0xa   :  { %1249 = shalt.err (!%p1246_p2)
}
   0xb   :  { %s1250_s29 = scalar_lea.vmem %s32_s19, 2048  ;;  %p1255_p4 = scmp.lt.s32.totalorder %s32_s19, %s32_s19 }
   0xc   :  { %p1251_p3 = scmp.ne.s32.totalorder %s32_s19, %s1250_s29  ;;  %p1256_p5 = scmp.lt.s32.totalorder %s1250_s29, %s1250_s29 }
   0xe   :  { %p1257_p6 = por %p1256_p5, %p1255_p4 }
  0x10   :  { %p1258_p7 = pnand %p1257_p6, %p1251_p3 }
  0x12   :  { %1261 = shalt.err (!%p1258_p7)
}
  0x13   :  { %s1382_s30 = smov 128   ;;  %s1383_s6 = smov 8  }
  0x14   :  { %37 = dma.hbm_to_vmem [thread:$0]  %s1793_s1, 2048, %s32_s19, [#allocation6], %s1382_s30, %s1382_s30, %s1383_s6  }
  0x15   :  { %s1262_s11 = scalar_lea.hbm %s1795_s3, 2048 }
  0x16   :  { %p1263_p8 = scmp.ne.s32.totalorder %s1795_s3, %s1262_s11  ;;  %p1266_p9 = scmp.lt.u32.totalorder %s1262_s11, %s1795_s3 }
  0x18   :  { %p1268_p10 = pnand %p1266_p9, %p1263_p8 }
  0x1a   :  { %1271 = shalt.err (!%p1268_p10)
}
  0x1b   :  { %s1272_s16 = scalar_lea.vmem %s1418_s21, 2048  ;;  %p1277_p12 = scmp.lt.s32.totalorder %s1418_s21, %s1418_s21 }
  0x1c   :  { %p1273_p11 = scmp.ne.s32.totalorder %s1418_s21, %s1272_s16  ;;  %p1278_p13 = scmp.lt.s32.totalorder %s1272_s16, %s1272_s16 }
  0x1e   :  { %p1279_p0 = por %p1278_p13, %p1277_p12 }
  0x20   :  { %p1280_p1 = pnand %p1279_p0, %p1273_p11 }
  0x22   :  { %1283 = shalt.err (!%p1280_p1)
}
  0x23   :  { %61 = dma.hbm_to_vmem [thread:$0]  %s1795_s3, 2048, %s1418_s21, [#allocation9], %s1382_s30, %s1382_s30, %s1383_s6  }
  0x24   :  { %s1384_s18 = smov [#allocation2]   ;;  %s1385_s20 = smov [#allocation7]  }
  0x25   :  { %s19_s19 = sshll.u32 %s1384_s18, 4  ;;  %s43_s22 = sshll.u32 %s1385_s20, 4  ;;  %s20_s19 = int_to_ptr.vmem [resolvable:$true] %s19_s19  ;;  %s1455_s22 = int_to_ptr.vmem [resolvable:$true] %s43_s22 }
  0x26   :  { %s1284_s25 = scalar_lea.hbm %s1792_s0, 2048 }
  0x27   :  { %p1285_p2 = scmp.ne.s32.totalorder %s1792_s0, %s1284_s25  ;;  %p1288_p3 = scmp.lt.u32.totalorder %s1284_s25, %s1792_s0 }
  0x29   :  { %p1290_p4 = pnand %p1288_p3, %p1285_p2 }
  0x2b   :  { %1293 = shalt.err (!%p1290_p4)
}
  0x2c   :  { %s1294_s3 = scalar_lea.vmem %s20_s19, 2048  ;;  %p1299_p6 = scmp.lt.s32.totalorder %s20_s19, %s20_s19 }
  0x2d   :  { %p1295_p5 = scmp.ne.s32.totalorder %s20_s19, %s1294_s3  ;;  %p1300_p7 = scmp.lt.s32.totalorder %s1294_s3, %s1294_s3 }
  0x2f   :  { %p1301_p8 = por %p1300_p7, %p1299_p6 }
  0x31   :  { %p1302_p9 = pnand %p1301_p8, %p1295_p5 }
  0x33   :  { %1305 = shalt.err (!%p1302_p9)
}
  0x34   :  { %25 = dma.hbm_to_vmem [thread:$0]  %s1792_s0, 2048, %s20_s19, [#allocation3], %s1382_s30, %s1382_s30, %s1383_s6  }
  0x35   :  { %s1306_s10 = scalar_lea.hbm %s1794_s2, 2048 }
  0x36   :  { %p1307_p10 = scmp.ne.s32.totalorder %s1794_s2, %s1306_s10  ;;  %p1310_p11 = scmp.lt.u32.totalorder %s1306_s10, %s1794_s2 }
  0x38   :  { %p1312_p12 = pnand %p1310_p11, %p1307_p10 }
  0x3a   :  { %1315 = shalt.err (!%p1312_p12)
}
  0x3b   :  { %s1316_s15 = scalar_lea.vmem %s1455_s22, 2048  ;;  %p1321_p0 = scmp.lt.s32.totalorder %s1455_s22, %s1455_s22 }
  0x3c   :  { %p1317_p13 = scmp.ne.s32.totalorder %s1455_s22, %s1316_s15  ;;  %p1322_p1 = scmp.lt.s32.totalorder %s1316_s15, %s1316_s15 }
  0x3e   :  { %p1323_p2 = por %p1322_p1, %p1321_p0 }
  0x40   :  { %p1324_p3 = pnand %p1323_p2, %p1317_p13 }
  0x42   :  { %1327 = shalt.err (!%p1324_p3)
}
  0x43   :  { %49 = dma.hbm_to_vmem [thread:$0]  %s1794_s2, 2048, %s1455_s22, [#allocation6], %s1382_s30, %s1382_s30, %s1383_s6  }
  0x44   :  { %s1386_s1 = smov [#allocation10]   ;;  %s1328_s20 = scalar_lea.hbm %s1796_s4, 2048 }
  0x45   :  { %s67_s17 = sshll.u32 %s1386_s1, 4  ;;  %p1329_p4 = scmp.ne.s32.totalorder %s1796_s4, %s1328_s20  ;;  %s68_s17 = int_to_ptr.vmem [resolvable:$true] %s67_s17 }
  0x46   :  { %p1332_p5 = scmp.lt.u32.totalorder %s1328_s20, %s1796_s4 }
  0x48   :  { %p1334_p6 = pnand %p1332_p5, %p1329_p4 }
  0x4a   :  { %1337 = shalt.err (!%p1334_p6)
}
  0x4b   :  { %s1338_s27 = scalar_lea.vmem %s68_s17, 2048  ;;  %p1343_p8 = scmp.lt.s32.totalorder %s68_s17, %s68_s17 }
  0x4c   :  { %p1339_p7 = scmp.ne.s32.totalorder %s68_s17, %s1338_s27  ;;  %p1344_p9 = scmp.lt.s32.totalorder %s1338_s27, %s1338_s27 }
  0x4e   :  { %p1345_p10 = por %p1344_p9, %p1343_p8 }
  0x50   :  { %p1346_p11 = pnand %p1345_p10, %p1339_p7 }
  0x52   :  { %1349 = shalt.err (!%p1346_p11)
}
  0x53   :  { %73 = dma.hbm_to_vmem [thread:$0]  %s1796_s4, 2048, %s68_s17, [#allocation9], %s1382_s30, %s1382_s30, %s1383_s6  }
  0x54   :  { %1372 = dma.done.wait [#allocation3], 2048  }
  0x55   :  { %1373 = vsyncadd [#allocation3], 4294965248 }
  0x56   :  { %1374 = dma.done.wait [#allocation6], 4096  }
  0x57   :  { %1375 = vsyncadd [#allocation6], 4294963200 }
  0x58   :  { %1376 = dma.done.wait [#allocation9], 4096  }
  0x59   :  { %1377 = vsyncadd [#allocation9], 4294963200  ;;  %v106_v0 = vld [vmem:[#allocation2] sm:$0xff]  ;;  %v107_v1 = vld [vmem:[#allocation2 + $0x8] sm:$0xff]  ;;  %s1387_s4 = smov [#allocation11]  }
  0x5a   :  { %v108_v2 = vld [vmem:[#allocation2 + $0x10] sm:$0xff]  ;;  %v1507_v3 = vpack.c.bf16 %v107_v1, %v106_v0  ;;  %v109_v4 = vld [vmem:[#allocation2 + $0x18] sm:$0xff]  ;;  %v110_v6 = vld [vmem:[#allocation2 + $0x20] sm:$0xff]  ;;  %s874_s28 = sshll.u32 %s1387_s4, 4  ;;  %s875_s28 = int_to_ptr.vmem [resolvable:$true] %s874_s28 }
  0x5b   :  { %v1510_v5 = vpack.c.bf16 %v109_v4, %v108_v2  ;;  %v111_v7 = vld [vmem:[#allocation2 + $0x28] sm:$0xff]  ;;  %v1512_v8 = vld [vmem:[#allocation5] sm:$0xff]  ;;  %v112_v10 = vld [vmem:[#allocation2 + $0x30] sm:$0xff]  ;;  %s1350_s29 = scalar_lea.vmem %s875_s28, 2048  ;;  %p1355_p13 = scmp.lt.s32.totalorder %s875_s28, %s875_s28 }
  0x5c   :  { %210 = vxpose.xlu0.c.b16.start [1/8] %v1507_v3, 128  ;;  %v1514_v9 = vld [vmem:[#allocation5 + $0x8] sm:$0xff]  ;;  %v113_v11 = vld [vmem:[#allocation2 + $0x38] sm:$0xff]  ;;  %v138_v12 = vld [vmem:[#allocation7] sm:$0xff]  ;;  %v1519_v15 = vpack.c.bf16 %v111_v7, %v110_v6  ;;  %p1351_p12 = scmp.ne.s32.totalorder %s875_s28, %s1350_s29  ;;  %p1356_p0 = scmp.lt.s32.totalorder %s1350_s29, %s1350_s29 }
  0x5d   :  { %v139_v13 = vld [vmem:[#allocation7 + $0x8] sm:$0xff]  ;;  %v1516_v14 = vld [vmem:[#allocation5 + $0x10] sm:$0xff]  ;;  %v186_v16 = vadd.f32 %v138_v12, %v1512_v8  ;;  %v1523_v18 = vld [vmem:[#allocation5 + $0x18] sm:$0xff]  ;;  %v1538_v35 = vpack.c.bf16 %v113_v11, %v112_v10 }
  0x5e   :  { %v187_v17 = vadd.f32 %v139_v13, %v1514_v9  ;;  %v140_v19 = vld [vmem:[#allocation7 + $0x10] sm:$0xff]  ;;  %v141_v20 = vld [vmem:[#allocation7 + $0x18] sm:$0xff]  ;;  %v1527_v23 = vld [vmem:[#allocation5 + $0x20] sm:$0xff]  ;;  %p1357_p1 = por %p1356_p0, %p1355_p13 }
  0x5f   :  { %v188_v21 = vadd.f32 %v140_v19, %v1516_v14  ;;  %v189_v22 = vadd.f32 %v141_v20, %v1523_v18  ;;  %v1529_v24 = vld [vmem:[#allocation5 + $0x28] sm:$0xff]  ;;  %v142_v25 = vld [vmem:[#allocation7 + $0x20] sm:$0xff]  ;;  %v1532_v29 = vld [vmem:[#allocation5 + $0x30] sm:$0xff] }
  0x60   :  { %211 = vxpose.xlu0.c.b16.cont [2/8] %v1510_v5, 128  ;;  %v202_v26 = vpack.c.bf16 %v187_v17, %v186_v16  ;;  %v143_v27 = vld [vmem:[#allocation7 + $0x28] sm:$0xff]  ;;  %v190_v28 = vadd.f32 %v142_v25, %v1527_v23  ;;  %v1535_v32 = vld [vmem:[#allocation5 + $0x38] sm:$0xff]  ;;  %v144_v33 = vld [vmem:[#allocation7 + $0x30] sm:$0xff]  ;;  %p1358_p2 = pnand %p1357_p1, %p1351_p12 }
  0x61   :  { %v203_v30 = vpack.c.bf16 %v189_v22, %v188_v21  ;;  %v191_v31 = vadd.f32 %v143_v27, %v1529_v24  ;;  %v145_v34 = vld [vmem:[#allocation7 + $0x38] sm:$0xff]  ;;  %v114_v36 = vld [vmem:[#allocation2 + $0x40] sm:$0xff]  ;;  %v115_v37 = vld [vmem:[#allocation2 + $0x48] sm:$0xff]  ;;  %v192_v39 = vadd.f32 %v144_v33, %v1532_v29 }
  0x62   :  { %968 = vmatprep.subr.bf16.mxu0 %v202_v26  ;;  %v193_v40 = vadd.f32 %v145_v34, %v1535_v32  ;;  %v1542_v41 = vld [vmem:[#allocation5 + $0x40] sm:$0xff]  ;;  %v1544_v42 = vld [vmem:[#allocation5 + $0x48] sm:$0xff]  ;;  %v1547_v45 = vpack.c.bf16 %v115_v37, %v114_v36  ;;  %v116_v46 = vld [vmem:[#allocation2 + $0x50] sm:$0xff] }
  0x63   :  { %969 = vmatpush3.bf16.msra.mxu0 %v202_v26  ;;  %v204_v38 = vpack.c.bf16 %v191_v31, %v190_v28  ;;  %v146_v43 = vld [vmem:[#allocation7 + $0x40] sm:$0xff]  ;;  %v147_v44 = vld [vmem:[#allocation7 + $0x48] sm:$0xff]  ;;  %v117_v47 = vld [vmem:[#allocation2 + $0x58] sm:$0xff]  ;;  %v178_v31 = vpack.c.bf16 %v1514_v9, %v1512_v8 }
  0x64   :  { %212 = vxpose.xlu0.c.b16.cont [3/8] %v1519_v15, 128  ;;  %970 = vmatprep.subr.bf16.mxu0 %v203_v30  ;;  %v1549_v48 = vld [vmem:[#allocation5 + $0x50] sm:$0xff]  ;;  %v1551_v49 = vld [vmem:[#allocation5 + $0x58] sm:$0xff]  ;;  %v205_v51 = vpack.c.bf16 %v193_v40, %v192_v39  ;;  %v194_v52 = vadd.f32 %v146_v43, %v1542_v41  ;;  %v195_v53 = vadd.f32 %v147_v44, %v1544_v42  ;;  %v1090_v54 = vld [vmem:[#allocation8] ss:$8 sps:$4 sm:$0xff]  }
  0x65   :  { %v148_v50 = vld [vmem:[#allocation7 + $0x50] sm:$0xff]  ;;  %v149_v55 = vld [vmem:[#allocation7 + $0x58] sm:$0xff]  ;;  %v1556_v57 = vpack.c.bf16 %v117_v47, %v116_v46  ;;  %v118_v58 = vld [vmem:[#allocation2 + $0x60] sm:$0xff]  ;;  %1032 = vmatprep.subr.bf16.mxu1 %v1090_v54  ;;  %1048 = vmatprep.mubr.bf16.mxu1 %v178_v31  ;;  %v180_v39 = vpack.c.bf16 %v1529_v24, %v1527_v23  ;;  %v181_v40 = vpack.c.bf16 %v1535_v32, %v1532_v29 }
  0x66   :  { %v1091_v56 = vld [vmem:[#allocation8 + $0x10] ss:$8 sps:$4 sm:$0xff]   ;;  %v119_v59 = vld [vmem:[#allocation2 + $0x68] sm:$0xff]  ;;  %v1558_v60 = vld [vmem:[#allocation5 + $0x60] sm:$0xff]  ;;  %1033 = vmatpush3.bf16.xpose.msra.mxu1 %v1090_v54  ;;  %v206_v61 = vpack.c.bf16 %v195_v53, %v194_v52  ;;  %v196_v62 = vadd.f32 %v148_v50, %v1549_v48  ;;  %v197_v63 = vadd.f32 %v149_v55, %v1551_v49  ;;  %v182_v43 = vpack.c.bf16 %v1544_v42, %v1542_v41 }
  0x67   :  { %971 = vmatpush3.bf16.msra.mxu0 %v203_v30  ;;  %v1562_v0 = vld [vmem:[#allocation5 + $0x68] sm:$0xff]  ;;  %1034 = vmatprep.subr.bf16.mxu1 %v1091_v56  ;;  %v150_v1 = vld [vmem:[#allocation7 + $0x60] sm:$0xff]  ;;  %v1565_v4 = vpack.c.bf16 %v119_v59, %v118_v58  ;;  %v120_v6 = vld [vmem:[#allocation2 + $0x70] sm:$0xff]  ;;  %v183_v44 = vpack.c.bf16 %v1551_v49, %v1549_v48 }
  0x68   :  { %213 = vxpose.xlu0.c.b16.cont [4/8] %v1538_v35, 128  ;;  %972 = vmatprep.subr.bf16.mxu0 %v204_v38  ;;  %v151_v2 = vld [vmem:[#allocation7 + $0x68] sm:$0xff]  ;;  %v121_v7 = vld [vmem:[#allocation2 + $0x78] sm:$0xff]  ;;  %v1567_v10 = vld [vmem:[#allocation5 + $0x70] sm:$0xff]  ;;  %v207_v11 = vpack.c.bf16 %v197_v63, %v196_v62  ;;  %v198_v12 = vadd.f32 %v150_v1, %v1558_v60  ;;  %v184_v46 = vpack.c.bf16 %v1562_v0, %v1558_v60 }
  0x69   :  { %v199_v13 = vadd.f32 %v151_v2, %v1562_v0  ;;  %v1094_v16 = vld [vmem:[#allocation8 + $0x20] ss:$8 sps:$4 sm:$0xff]   ;;  %v1571_v17 = vld [vmem:[#allocation5 + $0x78] sm:$0xff]  ;;  %v152_v19 = vld [vmem:[#allocation7 + $0x70] sm:$0xff]  ;;  %v1574_v21 = vpack.c.bf16 %v121_v7, %v120_v6 }
  0x6a   :  { %v153_v20 = vld [vmem:[#allocation7 + $0x78] sm:$0xff]  ;;  %v200_v25 = vadd.f32 %v152_v19, %v1567_v10  ;;  %v1088_v30 = vld [vmem:[#allocation8 + $0x4] ss:$8 sps:$4 sm:$0xff]   ;;  %v1100_v33 = vld [vmem:[#allocation8 + $0x40] ss:$8 sps:$4 sm:$0xff]   ;;  %v185_v47 = vpack.c.bf16 %v1571_v17, %v1567_v10 }
  0x6b   :  { %973 = vmatpush3.bf16.msra.mxu0 %v204_v38  ;;  %v208_v22 = vpack.c.bf16 %v199_v13, %v198_v12  ;;  %v201_v26 = vadd.f32 %v153_v20, %v1571_v17  ;;  %v1097_v28 = vld [vmem:[#allocation8 + $0x30] ss:$8 sps:$4 sm:$0xff]   ;;  %v1106_v36 = vld [vmem:[#allocation8 + $0x60] ss:$8 sps:$4 sm:$0xff]   ;;  %v179_v38 = vpack.c.bf16 %v1523_v18, %v1516_v14  ;;  %v1096_v54 = vld [vmem:[#allocation8 + $0x24] ss:$8 sps:$4 sm:$0xff]  }
  0x6c   :  { %214 = vxpose.xlu0.c.b16.cont [5/8] %v1547_v45, 128  ;;  %974 = vmatprep.subr.bf16.mxu0 %v205_v51  ;;  %v1103_v34 = vld [vmem:[#allocation8 + $0x50] ss:$8 sps:$4 sm:$0xff]   ;;  %v1099_v58 = vld [vmem:[#allocation8 + $0x34] ss:$8 sps:$4 sm:$0xff]   ;;  %v1102_v62 = vld [vmem:[#allocation8 + $0x44] ss:$8 sps:$4 sm:$0xff]  }
  0x6d   :  { %v209_v27 = vpack.c.bf16 %v201_v26, %v200_v25  ;;  %v1109_v37 = vld [vmem:[#allocation8 + $0x70] ss:$8 sps:$4 sm:$0xff]   ;;  %v1105_v1 = vld [vmem:[#allocation8 + $0x54] ss:$8 sps:$4 sm:$0xff]   ;;  %v1108_v2 = vld [vmem:[#allocation8 + $0x64] ss:$8 sps:$4 sm:$0xff]  }
  0x6e   :  { %1035 = vmatpush3.bf16.xpose.msra.mxu1 %v1091_v56  ;;  %v1111_v6 = vld [vmem:[#allocation8 + $0x74] ss:$8 sps:$4 sm:$0xff]  }
  0x6f   :  { %975 = vmatpush3.bf16.msra.mxu0 %v205_v51  ;;  %1036 = vmatprep.subr.bf16.mxu1 %v1094_v16  ;;  %v1093_v51 = vld [vmem:[#allocation8 + $0x14] ss:$8 sps:$4 sm:$0xff]  }
  0x70   :  { %215 = vxpose.xlu0.c.b16.cont [6/8] %v1556_v57, 128  ;;  %976 = vmatprep.subr.bf16.mxu0 %v206_v61 }
  0x73   :  { %977 = vmatpush3.bf16.msra.mxu0 %v206_v61 }
  0x74   :  { %216 = vxpose.xlu0.c.b16.cont [7/8] %v1565_v4, 128  ;;  %978 = vmatprep.subr.bf16.mxu0 %v207_v11 }
  0x76   :  { %1037 = vmatpush3.bf16.xpose.msra.mxu1 %v1094_v16 }
  0x77   :  { %979 = vmatpush3.bf16.msra.mxu0 %v207_v11  ;;  %1038 = vmatprep.subr.bf16.mxu1 %v1097_v28 }
  0x78   :  { %217 = vxpose.xlu0.c.b16.end [8/8] %v1574_v21, 128  ;;  %980 = vmatprep.subr.bf16.mxu0 %v208_v22 }
  0x7b   :  { %981 = vmatpush3.bf16.msra.mxu0 %v208_v22 }
  0x7c   :  { %982 = vmatprep.subr.bf16.mxu0 %v209_v27 }
  0x7e   :  { %1039 = vmatpush3.bf16.xpose.msra.mxu1 %v1097_v28 }
  0x7f   :  { %983 = vmatpush3.bf16.msra.mxu0 %v209_v27  ;;  %1040 = vmatprep.subr.bf16.mxu1 %v1100_v33 }
  0x80   :  { %1000 = vmatprep.subr.bf16.mxu0 %v1088_v30 }
  0x86   :  { %1041 = vmatpush3.bf16.xpose.msra.mxu1 %v1100_v33 }
  0x87   :  { %1042 = vmatprep.subr.bf16.mxu1 %v1103_v34 }
  0x8e   :  { %1043 = vmatpush3.bf16.xpose.msra.mxu1 %v1103_v34 }
  0x8f   :  { %1044 = vmatprep.subr.bf16.mxu1 %v1106_v36 }
  0x96   :  { %1045 = vmatpush3.bf16.xpose.msra.mxu1 %v1106_v36 }
  0x97   :  { %1046 = vmatprep.subr.bf16.mxu1 %v1109_v37 }
  0x9e   :  { %1047 = vmatpush3.bf16.xpose.msra.mxu1 %v1109_v37 }
  0xa5   :  { %1049 = vmatmul.mubr.bf16.vlgmr.msra.gmra.mrb[0].mxu1 %v179_v38 }
  0xa6   :  { %1052 = vmatprep.mubr.bf16.mxu1 %v180_v39 }
  0xad   :  { %1053 = vmatmul.mubr.bf16.gmra.mrb[4].mxu1 %v181_v40 }
  0xae   :  { %1056 = vmatprep.mubr.bf16.mxu1 %v182_v43 }
  0xb5   :  { %1057 = vmatmul.mubr.bf16.gmra.mrb[8].mxu1 %v183_v44 }
  0xb6   :  { %1060 = vmatprep.mubr.bf16.mxu1 %v184_v46 }
  0xbd   :  { %1061 = vmatmul.mubr.bf16.gmra.mrb[12].mxu1 %v185_v47 }
  0xc2   :  { %v218_v50 = vpop.trf.xlu0 }
  0xc3   :  { %984 = vmatprep.mubr.bf16.mxu0 %v218_v50 }
  0xc6   :  { %v219_v52 = vpop.trf.xlu0 }
  0xc7   :  { %985 = vmatmul.mubr.bf16.vlgmr.msra.gmra.mrb[0].mxu0 %v219_v52 }
  0xc8   :  { %1001 = vmatpush3.bf16.xpose.msra.mxu0 %v1088_v30 }
  0xc9   :  { %1002 = vmatprep.subr.bf16.mxu0 %v1093_v51 }
  0xca   :  { %v220_v53 = vpop.trf.xlu0 }
  0xcb   :  { %988 = vmatprep.mubr.bf16.mxu0 %v220_v53 }
  0xce   :  { %v221_v55 = vpop.trf.xlu0 }
  0xcf   :  { %989 = vmatmul.mubr.bf16.gmra.mrb[4].mxu0 %v221_v55 }
  0xd0   :  { %1003 = vmatpush3.bf16.xpose.msra.mxu0 %v1093_v51 }
  0xd1   :  { %1004 = vmatprep.subr.bf16.mxu0 %v1096_v54 }
  0xd2   :  { %v222_v56 = vpop.trf.xlu0 }
  0xd3   :  { %992 = vmatprep.mubr.bf16.mxu0 %v222_v56 }
  0xd6   :  { %v223_v59 = vpop.trf.xlu0 }
  0xd7   :  { %993 = vmatmul.mubr.bf16.gmra.mrb[8].mxu0 %v223_v59 }
  0xd8   :  { %1005 = vmatpush3.bf16.xpose.msra.mxu0 %v1096_v54 }
  0xd9   :  { %1006 = vmatprep.subr.bf16.mxu0 %v1099_v58 }
  0xda   :  { %v224_v61 = vpop.trf.xlu0 }
  0xdb   :  { %996 = vmatprep.mubr.bf16.mxu0 %v224_v61 }
  0xde   :  { %v225_v63 = vpop.trf.xlu0 }
  0xdf   :  { %997 = vmatmul.mubr.bf16.gmra.mrb[12].mxu0 %v225_v63 }
  0xe0   :  { %1007 = vmatpush3.bf16.xpose.msra.mxu0 %v1099_v58  ;;  %1016 = vmatprep.mubr.bf16.mxu0 %v1507_v3 }
  0xe1   :  { %1008 = vmatprep.subr.bf16.mxu0 %v1102_v62 }
  0xe8   :  { %1009 = vmatpush3.bf16.xpose.msra.mxu0 %v1102_v62 }
  0xe9   :  { %1010 = vmatprep.subr.bf16.mxu0 %v1105_v1 }
  0xf0   :  { %1011 = vmatpush3.bf16.xpose.msra.mxu0 %v1105_v1 }
  0xf1   :  { %1012 = vmatprep.subr.bf16.mxu0 %v1108_v2 }
  0xf8   :  { %1013 = vmatpush3.bf16.xpose.msra.mxu0 %v1108_v2 }
  0xf9   :  { %1014 = vmatprep.subr.bf16.mxu0 %v1111_v6 }
 0x100   :  { %1015 = vmatpush3.bf16.xpose.msra.mxu0 %v1111_v6 }
 0x107   :  { %1017 = vmatmul.mubr.bf16.vlgmr.msra.gmra.mrb[16].mxu0 %v1510_v5 }
 0x108   :  { %1020 = vmatprep.mubr.bf16.mxu0 %v1519_v15 }
 0x10f   :  { %1021 = vmatmul.mubr.bf16.gmra.mrb[20].mxu0 %v1538_v35 }
 0x110   :  { %1024 = vmatprep.mubr.bf16.mxu0 %v1547_v45 }
 0x117   :  { %1025 = vmatmul.mubr.bf16.gmra.mrb[24].mxu0 %v1556_v57 }
 0x118   :  { %1028 = vmatprep.mubr.bf16.mxu0 %v1565_v4 }
 0x11f   :  { %1029 = vmatmul.mubr.bf16.gmra.mrb[28].mxu0 %v1574_v21 }
 0x178   :  { %v1603_v3 = vpop.f32.mrb[0].mxu1 }
 0x179   :  { %v1605_v7 = vpop.f32.mrb[1].mxu1 }
 0x17a   :  { %v1607_v11 = vpop.f32.mrb[2].mxu1 }
 0x17b   :  { %v1609_v12 = vpop.f32.mrb[3].mxu1 }
 0x180   :  { %v1611_v5 = vpop.f32.mrb[4].mxu1 }
 0x181   :  { %v1613_v15 = vpop.f32.mrb[5].mxu1 }
 0x182   :  { %v1615_v35 = vpop.f32.mrb[6].mxu1 }
 0x183   :  { %v1617_v45 = vpop.f32.mrb[7].mxu1 }
 0x188   :  { %v1619_v57 = vpop.f32.mrb[8].mxu1 }
 0x189   :  { %v1621_v4 = vpop.f32.mrb[9].mxu1 }
 0x18a   :  { %v1623_v13 = vpop.f32.mrb[10].mxu1 }
 0x18b   :  { %v1625_v16 = vpop.f32.mrb[11].mxu1 }
 0x190   :  { %v1627_v19 = vpop.f32.mrb[12].mxu1 }
 0x191   :  { %v1629_v20 = vpop.f32.mrb[13].mxu1 }
 0x192   :  { %v1631_v21 = vpop.f32.mrb[14].mxu1 }
 0x193   :  { %v1633_v25 = vpop.f32.mrb[15].mxu1 }
 0x19a   :  { %v986_v22 = vpop.f32.mrb[0].mxu0 }
 0x19b   :  { %v260_v26 = vpop.f32.mrb[1].mxu0  ;;  %v890_v47 = vmul.f32 -1.442695, %v986_v22 }
 0x19c   :  { %v987_v27 = vpop.f32.mrb[2].mxu0  ;;  %v888_v50 = vmul.f32 -1.442695, %v260_v26 }
 0x19d   :  { %v263_v28 = vpop.f32.mrb[3].mxu0  ;;  %v891_v51 = vmul.f32 -1.442695, %v987_v27  ;;  %1112 = vpow2.f32 %v890_v47 }
 0x19e   :  { %1114 = vpow2.f32 %v888_v50  ;;  %v889_v52 = vmul.f32 -1.442695, %v263_v28 }
 0x19f   :  { %1116 = vpow2.f32 %v891_v51 }
 0x1a0   :  { %1118 = vpow2.f32 %v889_v52 }
 0x1a2   :  { %v990_v30 = vpop.f32.mrb[4].mxu0 }
 0x1a3   :  { %v276_v31 = vpop.f32.mrb[5].mxu0  ;;  %v894_v53 = vmul.f32 -1.442695, %v990_v30 }
 0x1a4   :  { %v991_v33 = vpop.f32.mrb[6].mxu0  ;;  %v892_v54 = vmul.f32 -1.442695, %v276_v31 }
 0x1a5   :  { %v279_v34 = vpop.f32.mrb[7].mxu0  ;;  %v895_v55 = vmul.f32 -1.442695, %v991_v33  ;;  %1120 = vpow2.f32 %v894_v53  ;;  %v156_v53 = vld [vmem:[#allocation10 + $0x10] sm:$0xff] }
 0x1a6   :  { %v893_v56 = vmul.f32 -1.442695, %v279_v34  ;;  %1122 = vpow2.f32 %v892_v54 }
 0x1a7   :  { %v1113_v58 = vpop.eup %1112  ;;  %1124 = vpow2.f32 %v895_v55 }
 0x1a8   :  { %v1115_v59 = vpop.eup %1114  ;;  %1126 = vpow2.f32 %v893_v56  ;;  %v373_v62 = vadd.f32 1.0, %v1113_v58 }
 0x1a9   :  { %v1117_v61 = vpop.eup %1116  ;;  %v371_v63 = vadd.f32 1.0, %v1115_v59 }
 0x1aa   :  { %v994_v36 = vpop.f32.mrb[8].mxu0  ;;  %v1119_v1 = vpop.eup %1118  ;;  %v374_v2 = vadd.f32 1.0, %v1117_v61  ;;  %1128 = vrcp.f32 %v373_v62  ;;  %v157_v61 = vld [vmem:[#allocation10 + $0x18] sm:$0xff] }
 0x1ab   :  { %v292_v37 = vpop.f32.mrb[9].mxu0  ;;  %v898_v6 = vmul.f32 -1.442695, %v994_v36  ;;  %1130 = vrcp.f32 %v371_v63  ;;  %v372_v27 = vadd.f32 1.0, %v1119_v1  ;;  %v155_v1 = vld [vmem:[#allocation10 + $0x8] sm:$0xff] }
 0x1ac   :  { %v995_v38 = vpop.f32.mrb[10].mxu0  ;;  %v896_v22 = vmul.f32 -1.442695, %v292_v37  ;;  %1132 = vrcp.f32 %v374_v2 }
 0x1ad   :  { %v295_v39 = vpop.f32.mrb[11].mxu0  ;;  %v899_v30 = vmul.f32 -1.442695, %v995_v38  ;;  %1134 = vpow2.f32 %v898_v6 }
 0x1ae   :  { %v897_v33 = vmul.f32 -1.442695, %v295_v39  ;;  %1136 = vpow2.f32 %v896_v22  ;;  %v154_v39 = vld [vmem:[#allocation10] sm:$0xff] }
 0x1af   :  { %v1121_v26 = vpop.eup %1120  ;;  %1138 = vrcp.f32 %v372_v27 }
 0x1b0   :  { %v1123_v28 = vpop.eup %1122  ;;  %v377_v34 = vadd.f32 1.0, %v1121_v26  ;;  %1140 = vpow2.f32 %v899_v30 }
 0x1b1   :  { %v1125_v31 = vpop.eup %1124  ;;  %v375_v50 = vadd.f32 1.0, %v1123_v28  ;;  %1142 = vpow2.f32 %v897_v33 }
 0x1b2   :  { %v998_v40 = vpop.f32.mrb[12].mxu0  ;;  %v1127_v47 = vpop.eup %1126  ;;  %v378_v51 = vadd.f32 1.0, %v1125_v31  ;;  %1144 = vrcp.f32 %v377_v34 }
 0x1b3   :  { %v308_v43 = vpop.f32.mrb[13].mxu0  ;;  %v902_v36 = vmul.f32 -1.442695, %v998_v40  ;;  %v376_v37 = vadd.f32 1.0, %v1127_v47  ;;  %1146 = vrcp.f32 %v375_v50 }
 0x1b4   :  { %v1635_v44 = vpop.f32.mrb[14].mxu0  ;;  %v900_v52 = vmul.f32 -1.442695, %v308_v43  ;;  %v1639_v55 = vpop.eup %1128  ;;  %1148 = vrcp.f32 %v378_v51  ;;  %v160_v51 = vld [vmem:[#allocation10 + $0x30] sm:$0xff] }
 0x1b5   :  { %v1637_v46 = vpop.f32.mrb[15].mxu0  ;;  %v1642_v58 = vpop.eup %1130  ;;  %1150 = vpow2.f32 %v902_v36  ;;  %v903_v27 = vmul.f32 -1.442695, %v1635_v44 }
 0x1b6   :  { %v1645_v62 = vpop.eup %1132  ;;  %1152 = vrcp.f32 %v376_v37  ;;  %v901_v30 = vmul.f32 -1.442695, %v1637_v46  ;;  %v158_v37 = vld [vmem:[#allocation10 + $0x20] sm:$0xff] }
 0x1b7   :  { %v1135_v6 = vpop.eup %1134  ;;  %1154 = vpow2.f32 %v900_v52 }
 0x1b8   :  { %v1137_v26 = vpop.eup %1136 }
 0x1b9   :  { %v1650_v28 = vpop.eup %1138  ;;  %v379_v47 = vadd.f32 1.0, %v1137_v26 }
 0x1ba   :  { %v1141_v33 = vpop.eup %1140 }
 0x1bb   :  { %v1143_v34 = vpop.eup %1142 }
 0x1da   :  { %v1018_v54 = vpop.f32.mrb[16].mxu0 }
 0x1db   :  { %v639_v38 = vadd.f32 %v1603_v3, %v1018_v54  ;;  %v501_v56 = vpop.f32.mrb[17].mxu0  ;;  %v161_v54 = vld [vmem:[#allocation10 + $0x38] sm:$0xff] }
 0x1dc   :  { %v631_v59 = vadd.f32 %v1605_v7, %v501_v56  ;;  %v1019_v40 = vpop.f32.mrb[18].mxu0 }
 0x1dd   :  { %v695_v43 = vadd.f32 %v639_v38, %v156_v53  ;;  %v642_v63 = vadd.f32 %v1607_v11, %v1019_v40  ;;  %v504_v2 = vpop.f32.mrb[19].mxu0  ;;  %v381_v11 = vadd.f32 1.0, %v1135_v6  ;;  %v380_v6 = vadd.f32 1.0, %v1143_v34 }
 0x1de   :  { %v693_v3 = vadd.f32 %v631_v59, %v154_v39  ;;  %v634_v22 = vadd.f32 %v1609_v12, %v504_v2  ;;  %v1653_v12 = vpop.eup %1144 }
 0x1df   :  { %1156 = vtanh.f32 %v695_v43  ;;  %v696_v7 = vadd.f32 %v642_v63, %v157_v61  ;;  %v1656_v52 = vpop.eup %1146  ;;  %v159_v61 = vld [vmem:[#allocation10 + $0x28] sm:$0xff] }
 0x1e0   :  { %1158 = vtanh.f32 %v693_v3  ;;  %v694_v31 = vadd.f32 %v634_v22, %v155_v1  ;;  %v1659_v38 = vpop.eup %1148  ;;  %v382_v1 = vadd.f32 1.0, %v1141_v33 }
 0x1e1   :  { %1160 = vtanh.f32 %v696_v7  ;;  %v1151_v40 = vpop.eup %1150  ;;  %v164_v7 = vld [vmem:[#allocation10 + $0x50] sm:$0xff] }
 0x1e2   :  { %1162 = vtanh.f32 %v694_v31  ;;  %v1022_v50 = vpop.f32.mrb[20].mxu0  ;;  %v1663_v63 = vpop.eup %1152  ;;  %v385_v26 = vadd.f32 1.0, %v1151_v40 }
 0x1e3   :  { %1164 = vpow2.f32 %v903_v27  ;;  %v655_v44 = vadd.f32 %v1611_v5, %v1022_v50  ;;  %v517_v36 = vpop.f32.mrb[21].mxu0  ;;  %v1155_v2 = vpop.eup %1154 }
 0x1e4   :  { %1166 = vpow2.f32 %v901_v30  ;;  %v647_v46 = vadd.f32 %v1613_v15, %v517_v36  ;;  %v1023_v53 = vpop.f32.mrb[22].mxu0 }
 0x1e5   :  { %1168 = vrcp.f32 %v381_v11  ;;  %v699_v39 = vadd.f32 %v655_v44, %v160_v51  ;;  %v658_v56 = vadd.f32 %v1615_v35, %v1023_v53  ;;  %v520_v59 = vpop.f32.mrb[23].mxu0  ;;  %v162_v11 = vld [vmem:[#allocation10 + $0x40] sm:$0xff]  ;;  %v165_v44 = vld [vmem:[#allocation10 + $0x58] sm:$0xff] }
 0x1e6   :  { %1170 = vrcp.f32 %v379_v47  ;;  %v697_v5 = vadd.f32 %v647_v46, %v158_v37  ;;  %v650_v43 = vadd.f32 %v1617_v45, %v520_v59 }
 0x1e7   :  { %1172 = vtanh.f32 %v699_v39  ;;  %v700_v15 = vadd.f32 %v658_v56, %v161_v54  ;;  %v163_v54 = vld [vmem:[#allocation10 + $0x48] sm:$0xff] }
 0x1e8   :  { %1174 = vtanh.f32 %v697_v5  ;;  %v698_v3 = vadd.f32 %v650_v43, %v159_v61  ;;  %v383_v61 = vadd.f32 1.0, %v1155_v2 }
 0x1e9   :  { %v1157_v22 = vpop.eup %1156  ;;  %1176 = vtanh.f32 %v700_v15 }
 0x1ea   :  { %v1159_v35 = vpop.eup %1158  ;;  %1178 = vtanh.f32 %v698_v3  ;;  %v1026_v27 = vpop.f32.mrb[24].mxu0  ;;  %v727_v30 = vmul.f32 %v1157_v22, %v1639_v55 }
 0x1eb   :  { %v1161_v31 = vpop.eup %1160  ;;  %1180 = vrcp.f32 %v382_v1  ;;  %v671_v45 = vadd.f32 %v1619_v57, %v1026_v27  ;;  %v533_v33 = vpop.f32.mrb[25].mxu0  ;;  %v725_v47 = vmul.f32 %v1159_v35, %v1642_v58  ;;  %v166_v27 = vld [vmem:[#allocation10 + $0x60] sm:$0xff] }
 0x1ec   :  { %v1163_v34 = vpop.eup %1162  ;;  %1182 = vrcp.f32 %v380_v6  ;;  %v663_v50 = vadd.f32 %v1621_v4, %v533_v33  ;;  %v1027_v51 = vpop.f32.mrb[26].mxu0  ;;  %v1670_v36 = vadd.f32 %v727_v30, %v1516_v14  ;;  %v728_v37 = vmul.f32 %v1161_v31, %v1645_v62  ;;  %v168_v6 = vld [vmem:[#allocation10 + $0x70] sm:$0xff] }
 0x1ed   :  { %v1165_v55 = vpop.eup %1164  ;;  %1184 = vrcp.f32 %v385_v26  ;;  %v703_v46 = vadd.f32 %v671_v45, %v164_v7  ;;  %v674_v57 = vadd.f32 %v1623_v13, %v1027_v51  ;;  %v536_v53 = vpop.f32.mrb[27].mxu0  ;;  %v726_v58 = vmul.f32 %v1163_v34, %v1650_v28  ;;  %v169_v45 = vld [vmem:[#allocation10 + $0x78] sm:$0xff] }
 0x1ee   :  { %v1167_v39 = vpop.eup %1166  ;;  %v701_v56 = vadd.f32 %v663_v50, %v162_v11  ;;  %v666_v4 = vadd.f32 %v1625_v16, %v536_v53  ;;  %v759_v59 = vmul.f32 %v1670_v36, %v1670_v36  ;;  %v1679_v14 = vadd.f32 %v725_v47, %v1512_v8 }
 0x1ef   :  { %v1169_v62 = vpop.eup %1168  ;;  %1186 = vtanh.f32 %v703_v46  ;;  %v704_v40 = vadd.f32 %v674_v57, %v165_v44  ;;  %v386_v13 = vadd.f32 1.0, %v1165_v55  ;;  %v384_v1 = vadd.f32 1.0, %v1167_v39 }
 0x1f0   :  { %v1171_v5 = vpop.eup %1170  ;;  %1188 = vtanh.f32 %v701_v56  ;;  %v702_v43 = vadd.f32 %v666_v4, %v163_v54  ;;  %777 = vadd.xlane.f32.xlu1 %v759_v59  ;;  %v757_v8 = vmul.f32 %v1679_v14, %v1679_v14  ;;  %v1684_v3 = vadd.f32 %v728_v37, %v1523_v18 }
 0x1f1   :  { %v1173_v28 = vpop.eup %1172  ;;  %1190 = vtanh.f32 %v704_v40  ;;  %v1697_v37 = vadd.f32 %v726_v58, %v1514_v9 }
 0x1f2   :  { %v1175_v15 = vpop.eup %1174  ;;  %1192 = vtanh.f32 %v702_v43  ;;  %v1030_v16 = vpop.f32.mrb[28].mxu0  ;;  %v731_v2 = vmul.f32 %v1173_v28, %v1653_v12 }
 0x1f3   :  { %v1177_v22 = vpop.eup %1176  ;;  %1194 = vrcp.f32 %v383_v61  ;;  %v687_v26 = vadd.f32 %v1627_v19, %v1030_v16  ;;  %v549_v35 = vpop.f32.mrb[29].mxu0  ;;  %v729_v7 = vmul.f32 %v1175_v15, %v1656_v52  ;;  %v167_v19 = vld [vmem:[#allocation10 + $0x68] sm:$0xff] }
 0x1f4   :  { %v1179_v30 = vpop.eup %1178  ;;  %1196 = vrcp.f32 %v386_v13  ;;  %v679_v31 = vadd.f32 %v1629_v20, %v549_v35  ;;  %773 = vadd.xlane.f32.xlu1 %v757_v8  ;;  %v1031_v33 = vpop.f32.mrb[30].mxu0  ;;  %v732_v18 = vmul.f32 %v1177_v22, %v1659_v38  ;;  %v760_v20 = vmul.f32 %v1684_v3, %v1684_v3 }
 0x1f5   :  { %v1181_v11 = vpop.eup %1180  ;;  %1198 = vrcp.f32 %v384_v1  ;;  %v707_v12 = vadd.f32 %v687_v26, %v168_v6  ;;  %v690_v47 = vadd.f32 %v1631_v21, %v1031_v33  ;;  %v552_v34 = vpop.f32.mrb[31].mxu0  ;;  %v730_v50 = vmul.f32 %v1179_v30, %v1663_v63 }
 0x1f6   :  { %v1183_v51 = vpop.eup %1182  ;;  %v705_v52 = vadd.f32 %v679_v31, %v166_v27  ;;  %v682_v44 = vadd.f32 %v1633_v25, %v552_v34  ;;  %v758_v63 = vmul.f32 %v1697_v37, %v1697_v37  ;;  %v1702_v25 = vadd.f32 %v731_v2, %v1532_v29 }
 0x1f7   :  { %v1185_v38 = vpop.eup %1184  ;;  %1200 = vtanh.f32 %v707_v12  ;;  %v708_v55 = vadd.f32 %v690_v47, %v169_v45  ;;  %v1710_v13 = vadd.f32 %v729_v7, %v1527_v23  ;;  %v1717_v28 = vadd.f32 %v732_v18, %v1535_v32 }
 0x1f8   :  { %1202 = vtanh.f32 %v705_v52  ;;  %v706_v46 = vadd.f32 %v682_v44, %v167_v19  ;;  %779 = vadd.xlane.f32.xlu1 %v760_v20  ;;  %v763_v40 = vmul.f32 %v1702_v25, %v1702_v25  ;;  %v1722_v22 = vadd.f32 %v730_v50, %v1529_v24 }
 0x1f9   :  { %v1187_v21 = vpop.eup %1186  ;;  %1204 = vtanh.f32 %v708_v55  ;;  %v764_v2 = vmul.f32 %v1717_v28, %v1717_v28 }
 0x1fa   :  { %v1189_v57 = vpop.eup %1188  ;;  %1206 = vtanh.f32 %v706_v46  ;;  %v735_v53 = vmul.f32 %v1187_v21, %v1169_v62  ;;  %v762_v27 = vmul.f32 %v1722_v22, %v1722_v22 }
 0x1fb   :  { %v1191_v54 = vpop.eup %1190  ;;  %v733_v9 = vmul.f32 %v1189_v57, %v1171_v5 }
 0x1fc   :  { %v1193_v58 = vpop.eup %1192  ;;  %775 = vadd.xlane.f32.xlu1 %v758_v63  ;;  %v736_v39 = vmul.f32 %v1191_v54, %v1181_v11  ;;  %v1735_v7 = vadd.f32 %v735_v53, %v1549_v48 }
 0x1fd   :  { %v1195_v56 = vpop.eup %1194  ;;  %v1705_v4 = vadd.f32 %v733_v9, %v1542_v41  ;;  %v734_v59 = vmul.f32 %v1193_v58, %v1183_v51  ;;  %v761_v41 = vmul.f32 %v1710_v13, %v1710_v13 }
 0x1fe   :  { %v1197_v61 = vpop.eup %1196  ;;  %v1742_v30 = vadd.f32 %v736_v39, %v1551_v49 }
 0x1ff   :  { %v1199_v29 = vpop.eup %1198  ;;  %v765_v62 = vmul.f32 %v1705_v4, %v1705_v4  ;;  %v1747_v31 = vadd.f32 %v734_v59, %v1544_v42 }
 0x200   :  { %785 = vadd.xlane.f32.xlu1 %v763_v40 }
 0x201   :  { %v1201_v5 = vpop.eup %1200  ;;  %789 = vadd.xlane.f32.xlu0 %v765_v62  ;;  %v766_v48 = vmul.f32 %v1747_v31, %v1747_v31 }
 0x202   :  { %v1203_v43 = vpop.eup %1202  ;;  %v739_v1 = vmul.f32 %v1201_v5, %v1185_v38 }
 0x203   :  { %v1205_v15 = vpop.eup %1204  ;;  %v737_v16 = vmul.f32 %v1203_v43, %v1195_v56 }
 0x204   :  { %v1207_v6 = vpop.eup %1206  ;;  %781 = vadd.xlane.f32.xlu1 %v761_v41  ;;  %v740_v23 = vmul.f32 %v1205_v15, %v1197_v61  ;;  %v1757_v33 = vadd.f32 %v739_v1, %v1567_v10 }
 0x205   :  { %v738_v8 = vmul.f32 %v1207_v6, %v1199_v29  ;;  %v1752_v45 = vadd.f32 %v737_v16, %v1558_v60 }
 0x206   :  { %v1730_v35 = vadd.f32 %v740_v23, %v1571_v17  ;;  %v768_v17 = vmul.f32 %v1742_v30, %v1742_v30  ;;  %v771_v18 = vmul.f32 %v1757_v33, %v1757_v33 }
 0x207   :  { %v1725_v26 = vadd.f32 %v738_v8, %v1562_v0  ;;  %v767_v0 = vmul.f32 %v1735_v7, %v1735_v7  ;;  %v769_v49 = vmul.f32 %v1752_v45, %v1752_v45 }
 0x208   :  { %787 = vadd.xlane.f32.xlu1 %v764_v2  ;;  %v772_v24 = vmul.f32 %v1730_v35, %v1730_v35 }
 0x209   :  { %v770_v32 = vmul.f32 %v1725_v26, %v1725_v26 }
 0x20b   :  { %799 = vadd.xlane.f32.xlu0 %v770_v32 }
 0x20c   :  { %783 = vadd.xlane.f32.xlu1 %v762_v27 }
 0x20f   :  { %803 = vadd.xlane.f32.xlu0 %v772_v24 }
 0x210   :  { %793 = vadd.xlane.f32.xlu1 %v767_v0 }
 0x214   :  { %795 = vadd.xlane.f32.xlu1 %v768_v17 }
 0x218   :  { %791 = vadd.xlane.f32.xlu1 %v766_v48 }
 0x21c   :  { %797 = vadd.xlane.f32.xlu1 %v769_v49 }
 0x220   :  { %801 = vadd.xlane.f32.xlu1 %v771_v18 }
 0x27d   :  { %v778_v42 = vpop.xlane.xlu1 %777 }
 0x27e   :  { %v807_v11 = vmax.f32 %v778_v42, 1e-24 }
 0x280   :  { %1208 = vrsqrt.f32 %v807_v11 }
 0x281   :  { %v774_v12 = vpop.xlane.xlu1 %773 }
 0x282   :  { %v805_v47 = vmax.f32 %v774_v12, 1e-24 }
 0x284   :  { %1210 = vrsqrt.f32 %v805_v47 }
 0x285   :  { %v780_v60 = vpop.xlane.xlu1 %779 }
 0x286   :  { %v808_v34 = vmax.f32 %v780_v60, 1e-24 }
 0x288   :  { %1212 = vrsqrt.f32 %v808_v34 }
 0x289   :  { %v776_v19 = vpop.xlane.xlu1 %775 }
 0x28a   :  { %v1209_v50 = vpop.eup %1208  ;;  %v806_v51 = vmax.f32 %v776_v19, 1e-24 }
 0x28b   :  { %v839_v10 = vmul.f32 %v1209_v50, %v1670_v36 }
 0x28c   :  { %1214 = vrsqrt.f32 %v806_v51 }
 0x28d   :  { %855 = vst [vmem:[#allocation11 + $0x10] sm:$0xff] %v839_v10  ;;  %v786_v52 = vpop.xlane.xlu1 %785 }
 0x28e   :  { %v1211_v44 = vpop.eup %1210  ;;  %v811_v20 = vmax.f32 %v786_v52, 1e-24  ;;  %v790_v38 = vpop.xlane.xlu0 %789 }
 0x28f   :  { %v837_v55 = vmul.f32 %v1211_v44, %v1679_v14  ;;  %v813_v46 = vmax.f32 %v790_v38, 1e-24 }
 0x290   :  { %1216 = vrsqrt.f32 %v811_v20 }
 0x291   :  { %853 = vst [vmem:[#allocation11] sm:$0xff] %v837_v55  ;;  %1218 = vrsqrt.f32 %v813_v46  ;;  %v782_v21 = vpop.xlane.xlu1 %781 }
 0x292   :  { %v1213_v57 = vpop.eup %1212  ;;  %v809_v63 = vmax.f32 %v782_v21, 1e-24 }
 0x293   :  { %v840_v53 = vmul.f32 %v1213_v57, %v1684_v3 }
 0x294   :  { %1220 = vrsqrt.f32 %v809_v63 }
 0x295   :  { %856 = vst [vmem:[#allocation11 + $0x18] sm:$0xff] %v840_v53  ;;  %v788_v36 = vpop.xlane.xlu1 %787 }
 0x296   :  { %v1215_v54 = vpop.eup %1214  ;;  %v812_v9 = vmax.f32 %v788_v36, 1e-24 }
 0x297   :  { %v838_v58 = vmul.f32 %v1215_v54, %v1697_v37 }
 0x298   :  { %1222 = vrsqrt.f32 %v812_v9  ;;  %v800_v39 = vpop.xlane.xlu0 %799 }
 0x299   :  { %854 = vst [vmem:[#allocation11 + $0x8] sm:$0xff] %v838_v58  ;;  %v818_v14 = vmax.f32 %v800_v39, 1e-24  ;;  %v784_v56 = vpop.xlane.xlu1 %783 }
 0x29a   :  { %v1217_v59 = vpop.eup %1216  ;;  %v810_v61 = vmax.f32 %v784_v56, 1e-24 }
 0x29b   :  { %v1219_v40 = vpop.eup %1218  ;;  %v843_v29 = vmul.f32 %v1217_v59, %v1702_v25  ;;  %1224 = vrsqrt.f32 %v818_v14 }
 0x29c   :  { %v845_v3 = vmul.f32 %v1219_v40, %v1705_v4  ;;  %1226 = vrsqrt.f32 %v810_v61  ;;  %v804_v62 = vpop.xlane.xlu0 %803 }
 0x29d   :  { %859 = vst [vmem:[#allocation11 + $0x30] sm:$0xff] %v843_v29  ;;  %v820_v5 = vmax.f32 %v804_v62, 1e-24  ;;  %v794_v43 = vpop.xlane.xlu1 %793 }
 0x29e   :  { %v1221_v41 = vpop.eup %1220  ;;  %861 = vst [vmem:[#allocation11 + $0x40] sm:$0xff] %v845_v3  ;;  %v815_v37 = vmax.f32 %v794_v43, 1e-24 }
 0x29f   :  { %v841_v1 = vmul.f32 %v1221_v41, %v1710_v13  ;;  %1228 = vrsqrt.f32 %v820_v5 }
 0x2a0   :  { %1230 = vrsqrt.f32 %v815_v37 }
 0x2a1   :  { %857 = vst [vmem:[#allocation11 + $0x20] sm:$0xff] %v841_v1  ;;  %v796_v15 = vpop.xlane.xlu1 %795 }
 0x2a2   :  { %v1223_v16 = vpop.eup %1222  ;;  %v816_v6 = vmax.f32 %v796_v15, 1e-24 }
 0x2a3   :  { %v844_v25 = vmul.f32 %v1223_v16, %v1717_v28 }
 0x2a4   :  { %1232 = vrsqrt.f32 %v816_v6 }
 0x2a5   :  { %v1225_v4 = vpop.eup %1224  ;;  %860 = vst [vmem:[#allocation11 + $0x38] sm:$0xff] %v844_v25  ;;  %v792_v23 = vpop.xlane.xlu1 %791 }
 0x2a6   :  { %v1227_v8 = vpop.eup %1226  ;;  %v850_v2 = vmul.f32 %v1225_v4, %v1725_v26  ;;  %v814_v32 = vmax.f32 %v792_v23, 1e-24 }
 0x2a7   :  { %v842_v27 = vmul.f32 %v1227_v8, %v1722_v22 }
 0x2a8   :  { %866 = vst [vmem:[#allocation11 + $0x68] sm:$0xff] %v850_v2  ;;  %1234 = vrsqrt.f32 %v814_v32 }
 0x2a9   :  { %v1229_v13 = vpop.eup %1228  ;;  %858 = vst [vmem:[#allocation11 + $0x28] sm:$0xff] %v842_v27  ;;  %v798_v24 = vpop.xlane.xlu1 %797 }
 0x2aa   :  { %v1231_v0 = vpop.eup %1230  ;;  %v852_v17 = vmul.f32 %v1229_v13, %v1730_v35  ;;  %v817_v48 = vmax.f32 %v798_v24, 1e-24 }
 0x2ab   :  { %v847_v28 = vmul.f32 %v1231_v0, %v1735_v7 }
 0x2ac   :  { %868 = vst [vmem:[#allocation11 + $0x78] sm:$0xff] %v852_v17  ;;  %1236 = vrsqrt.f32 %v817_v48 }
 0x2ad   :  { %863 = vst [vmem:[#allocation11 + $0x50] sm:$0xff] %v847_v28  ;;  %v802_v49 = vpop.xlane.xlu1 %801 }
 0x2ae   :  { %v1233_v18 = vpop.eup %1232  ;;  %v819_v26 = vmax.f32 %v802_v49, 1e-24 }
 0x2af   :  { %v848_v42 = vmul.f32 %v1233_v18, %v1742_v30 }
 0x2b0   :  { %1238 = vrsqrt.f32 %v819_v26 }
 0x2b1   :  { %864 = vst [vmem:[#allocation11 + $0x58] sm:$0xff] %v848_v42 }
 0x2b2   :  { %v1235_v22 = vpop.eup %1234 }
 0x2b3   :  { %v846_v11 = vmul.f32 %v1235_v22, %v1747_v31 }
 0x2b5   :  { %862 = vst [vmem:[#allocation11 + $0x48] sm:$0xff] %v846_v11 }
 0x2b6   :  { %v1237_v12 = vpop.eup %1236 }
 0x2b7   :  { %v849_v35 = vmul.f32 %v1237_v12, %v1752_v45 }
 0x2b9   :  { %865 = vst [vmem:[#allocation11 + $0x60] sm:$0xff] %v849_v35 }
 0x2ba   :  { %v1239_v7 = vpop.eup %1238 }
 0x2bb   :  { %v851_v47 = vmul.f32 %v1239_v7, %v1757_v33 }
 0x2bd   :  { %867 = vst [vmem:[#allocation11 + $0x70] sm:$0xff] %v851_v47 }
 0x2be   :  { %1361 = shalt.err (!%p1358_p2)
}
 0x2bf   :  { %s1362_s7 = scalar_lea.hbm %s1797_s5, 2048 }
 0x2c0   :  { %p1363_p3 = scmp.ne.s32.totalorder %s1797_s5, %s1362_s7  ;;  %p1366_p4 = scmp.lt.u32.totalorder %s1362_s7, %s1797_s5 }
 0x2c2   :  { %p1368_p5 = pnand %p1366_p4, %p1363_p3 }
 0x2c4   :  { %1371 = shalt.err (!%p1368_p5)
}
 0x2c5   :  { %880 = dma.vmem_to_hbm [thread:$0]  %s875_s28, 2048, %s1797_s5, [#allocation4], %s1382_s30, %s1382_s30, %s1383_s6  }
 0x2c6   :  { %1378 = dma.done.wait [#allocation4], 2048  }
 0x2c7   :  { %1379 = vsyncadd [#allocation4], 4294965248 }
 0x2c8   :  { %884 = vsyncpa [#allocation3], 1 }
 0x2c9   :  { %885 = vsyncpa [#allocation6], 1 }
 0x2ca   :  { %886 = vsyncpa [#allocation9], 1 }
 0x2cb   :  { %887 = vsyncpa [#allocation4], 1 }

</bundles_post_ra>
